<compile_context>
chip_gen: v6e
topology: v6e:2x2x1
jax: 0.10.0
libtpu: 0.0.40
codegen_flags: <defaults>
</compile_context>

<pallas_src>
import jax
import jax.numpy as jnp
from jax.experimental import pallas as pl
from jax.experimental.pallas import tpu as pltpu


def _round_up(x, m):
    return ((x + m - 1) // m) * m


def qnetwork_kernel(x_ref, w1_ref, b1_ref, w2_ref, b2_ref, w3_ref, b3_ref, o_ref):
    # x: (TB, S) f32 (cast to bf16 here), weights bf16, biases f32, output (TB, A) f32.
    x = x_ref[...].astype(jnp.bfloat16)
    # dense1 + ReLU (bf16 MXU operands, f32 accumulate, f32 epilogue)
    h = jnp.dot(x, w1_ref[...], preferred_element_type=jnp.float32)          # (TB, Hp)
    h = jnp.maximum(h + b1_ref[...], 0.0)
    # dense2 + ReLU
    h = jnp.dot(h.astype(jnp.bfloat16), w2_ref[...],
                preferred_element_type=jnp.float32)                          # (TB, Hp)
    h = jnp.maximum(h + b2_ref[...], 0.0)
    # dense3 (no activation) -> only the A real output lanes
    q = jnp.dot(h.astype(jnp.bfloat16), w3_ref[...],
                preferred_element_type=jnp.float32)                          # (TB, A)
    o_ref[...] = (q + b3_ref[...]).astype(o_ref.dtype)


def prepare_params(params):
    """One-time padding/casting of weights (do this OUTSIDE the RL hot loop).

    Hidden dim is zero-padded to a multiple of 128 so intermediate activations
    are lane-dense; input dim (S) and output dim (A) are left unpadded.  Zero
    padding is exact through matmul + zero bias + ReLU.
    """
    w1, b1, w2, b2, w3, b3 = (params[k] for k in ("w1", "b1", "w2", "b2", "w3", "b3"))
    S, H = w1.shape
    A = w3.shape[1]
    Hp = _round_up(H, 128)

    pad2 = lambda a, r, c: jnp.pad(a, ((0, r - a.shape[0]), (0, c - a.shape[1])))

    return {
        "w1": pad2(w1, S, Hp).astype(jnp.bfloat16),     # (S,  Hp) bf16
        "b1": pad2(b1, 1, Hp).astype(jnp.float32),      # (1,  Hp) f32
        "w2": pad2(w2, Hp, Hp).astype(jnp.bfloat16),    # (Hp, Hp) bf16
        "b2": pad2(b2, 1, Hp).astype(jnp.float32),      # (1,  Hp) f32
        "w3": pad2(w3, Hp, A).astype(jnp.bfloat16),     # (Hp, A ) bf16
        "b3": b3.reshape(1, A).astype(jnp.float32),     # (1,  A ) f32
    }


def qnetwork_forward(state, prep, *, block_batch=1024):
    """state: (B, state_size) f32.  prep: output of prepare_params."""
    B, S = state.shape
    Hp = prep["w1"].shape[1]
    A = prep["w3"].shape[1]

    # Batch tile: multiple of 8 sublanes, capped at block_batch, and capped at
    # ceil(B/2) (rounded to 8) so the "parallel" grid has >=2 steps when B>8
    # (uses both TensorCores on v7x; harmless on v5e/v6e).
    B8 = _round_up(B, 8)
    TB = min(_round_up(block_batch, 8), _round_up(-(-B8 // 2), 8))
    TB = max(TB, 8)
    Bp = _round_up(B8, TB)

    x_p = state if Bp == B else jnp.pad(state, ((0, Bp - B), (0, 0)))  # batch pad only

    # Weights/biases: constant index_map -> VMEM-resident across all grid steps.
    const = lambda shape: pl.BlockSpec(shape, lambda i: (0, 0))

    q_p = pl.pallas_call(
        qnetwork_kernel,
        out_shape=jax.ShapeDtypeStruct((Bp, A), jnp.float32),
        grid=(Bp // TB,),
        in_specs=[
            pl.BlockSpec((TB, S), lambda i: (i, 0)),   # batch-tiled, pipelined input (S = full dim)
            const((S, Hp)), const((1, Hp)),
            const((Hp, Hp)), const((1, Hp)),
            const((Hp, A)), const((1, A)),
        ],
        out_specs=pl.BlockSpec((TB, A), lambda i: (i, 0)),   # only the A real lanes written back
        compiler_params=pltpu.CompilerParams(
            dimension_semantics=("parallel",)),              # shards batch over TCs on v7x
    )(x_p, prep["w1"], prep["b1"], prep["w2"], prep["b2"], prep["w3"], prep["b3"])

    return q_p[:B]   # drop padded batch rows


def init_params(key, state_size, action_size):
    """Deterministic init mimicking nn.Linear's U(-1/sqrt(fan_in), +1/sqrt(fan_in)).
    Weights stored (in_features, out_features) so each layer is x @ W + b
    (equivalent to PyTorch's x @ W.T + b with its (out, in) storage)."""
    hidden = 5 * state_size
    keys = jax.random.split(key, 6)

    def linear(kw, kb, fan_in, fan_out):
        bound = 1.0 / jnp.sqrt(jnp.float32(fan_in))
        w = jax.random.uniform(kw, (fan_in, fan_out), jnp.float32, -bound, bound)
        b = jax.random.uniform(kb, (1, fan_out), jnp.float32, -bound, bound)
        return w, b

    w1, b1 = linear(keys[0], keys[1], state_size, hidden)
    w2, b2 = linear(keys[2], keys[3], hidden, hidden)
    w3, b3 = linear(keys[4], keys[5], hidden, action_size)
    return {"w1": w1, "b1": b1, "w2": w2, "b2": b2, "w3": w3, "b3": b3}


def reference_forward(state, params):
    """Pure-f32 reference (PyTorch semantics)."""
    h = jnp.maximum(state @ params["w1"] + params["b1"], 0.0)
    h = jnp.maximum(h @ params["w2"] + params["b2"], 0.0)
    return h @ params["w3"] + params["b3"]


def reference_forward_bf16(state, params):
    """Reference with the same bf16-operand / f32-accumulate scheme as the kernel."""
    bf = jnp.bfloat16
    dot = lambda a, b: jnp.dot(a.astype(bf), b.astype(bf),
                               preferred_element_type=jnp.float32)
    h = jnp.maximum(dot(state, params["w1"]) + params["b1"], 0.0)
    h = jnp.maximum(dot(h, params["w2"]) + params["b2"], 0.0)
    return dot(h, params["w3"]) + params["b3"]


if __name__ == "__main__":
    state_size = 8     # LunarLander-v2 observation dim
    action_size = 4    # LunarLander-v2 action dim
    batch = 2

    key = jax.random.PRNGKey(0)
    k_params, k_state = jax.random.split(key)
    params = init_params(k_params, state_size, action_size)
    prep = prepare_params(params)            # one-time padding/cast, outside hot path
    state = jax.random.normal(k_state, (batch, state_size), dtype=jnp.float32)

    q = qnetwork_forward(state, prep)
    q = jax.block_until_ready(q)

    assert q.shape == (batch, action_size)
    # Tight check against a reference that uses the same bf16-operand math.
    q_ref_bf16 = reference_forward_bf16(state, params)
    assert jnp.allclose(q, q_ref_bf16, atol=1e-2, rtol=1e-2)
    # Loose check against the pure-f32 PyTorch-equivalent forward (bf16 operand error).
    q_ref_f32 = reference_forward(state, params)
    assert jnp.allclose(q, q_ref_f32, atol=5e-2, rtol=5e-2)

    print("KERNEL_OK")
</pallas_src>

<mosaic_0001>
module attributes {stable_mosaic.version = 11 : i64} {
  func.func @qnetwork_kernel(%arg0: i32, %arg1: memref<8x8xf32, #tpu.memory_space<vmem>>, %arg2: memref<8x128xbf16, #tpu.memory_space<vmem>>, %arg3: memref<1x128xf32, #tpu.memory_space<vmem>>, %arg4: memref<128x128xbf16, #tpu.memory_space<vmem>>, %arg5: memref<1x128xf32, #tpu.memory_space<vmem>>, %arg6: memref<128x4xbf16, #tpu.memory_space<vmem>>, %arg7: memref<1x4xf32, #tpu.memory_space<vmem>>, %arg8: memref<8x4xf32, #tpu.memory_space<vmem>>) attributes {dimension_semantics = [#tpu.dimension_semantics<parallel>], iteration_bounds = array<i64: 1>, scalar_prefetch = 0 : i64, scratch_operands = 0 : i64, tpu.core_type = #tpu.core_type<tc>, window_params = [{transform_indices = @transform_0, window_bounds = array<i64: 8, 8>}, {pipeline_mode = #tpu.pipeline_mode<synchronous>, transform_indices = @transform_1, window_bounds = array<i64: 8, 128>}, {pipeline_mode = #tpu.pipeline_mode<synchronous>, transform_indices = @transform_2, window_bounds = array<i64: 1, 128>}, {pipeline_mode = #tpu.pipeline_mode<synchronous>, transform_indices = @transform_3, window_bounds = array<i64: 128, 128>}, {pipeline_mode = #tpu.pipeline_mode<synchronous>, transform_indices = @transform_4, window_bounds = array<i64: 1, 128>}, {pipeline_mode = #tpu.pipeline_mode<synchronous>, transform_indices = @transform_5, window_bounds = array<i64: 128, 4>}, {pipeline_mode = #tpu.pipeline_mode<synchronous>, transform_indices = @transform_6, window_bounds = array<i64: 1, 4>}, {transform_indices = @transform_7, window_bounds = array<i64: 8, 4>}]} {
    %c0 = arith.constant 0 : index
    %c0_0 = arith.constant 0 : index
    %0 = vector.load %arg1[%c0, %c0_0] : memref<8x8xf32, #tpu.memory_space<vmem>>, vector<8x8xf32>
    %1 = arith.truncf %0 : vector<8x8xf32> to vector<8x8xbf16>
    %c0_1 = arith.constant 0 : index
    %c0_2 = arith.constant 0 : index
    %2 = vector.load %arg2[%c0_1, %c0_2] : memref<8x128xbf16, #tpu.memory_space<vmem>>, vector<8x128xbf16>
    %cst = arith.constant dense<0.000000e+00> : vector<8x128xf32>
    %3 = tpu.matmul %1, %2, %cst {dimension_numbers = #tpu.dot_dimension_numbers<[1], [0], [0], [1], [0, 0, 1, 1], [], []>} : vector<8x8xbf16>, vector<8x128xbf16>, vector<8x128xf32> -> vector<8x128xf32>
    %c0_3 = arith.constant 0 : index
    %c0_4 = arith.constant 0 : index
    %4 = vector.load %arg3[%c0_3, %c0_4] : memref<1x128xf32, #tpu.memory_space<vmem>>, vector<1x128xf32>
    %5 = vector.broadcast %4 : vector<1x128xf32> to vector<8x128xf32>
    %6 = arith.addf %3, %5 : vector<8x128xf32>
    %cst_5 = arith.constant 0.000000e+00 : f32
    %7 = vector.broadcast %cst_5 : f32 to vector<8x128xf32>
    %8 = arith.maximumf %6, %7 : vector<8x128xf32>
    %9 = arith.truncf %8 : vector<8x128xf32> to vector<8x128xbf16>
    %c0_6 = arith.constant 0 : index
    %c0_7 = arith.constant 0 : index
    %10 = vector.load %arg4[%c0_6, %c0_7] : memref<128x128xbf16, #tpu.memory_space<vmem>>, vector<128x128xbf16>
    %cst_8 = arith.constant dense<0.000000e+00> : vector<8x128xf32>
    %11 = tpu.matmul %9, %10, %cst_8 {dimension_numbers = #tpu.dot_dimension_numbers<[1], [0], [0], [1], [0, 0, 1, 1], [], []>} : vector<8x128xbf16>, vector<128x128xbf16>, vector<8x128xf32> -> vector<8x128xf32>
    %c0_9 = arith.constant 0 : index
    %c0_10 = arith.constant 0 : index
    %12 = vector.load %arg5[%c0_9, %c0_10] : memref<1x128xf32, #tpu.memory_space<vmem>>, vector<1x128xf32>
    %13 = vector.broadcast %12 : vector<1x128xf32> to vector<8x128xf32>
    %14 = arith.addf %11, %13 : vector<8x128xf32>
    %cst_11 = arith.constant 0.000000e+00 : f32
    %15 = vector.broadcast %cst_11 : f32 to vector<8x128xf32>
    %16 = arith.maximumf %14, %15 : vector<8x128xf32>
    %17 = arith.truncf %16 : vector<8x128xf32> to vector<8x128xbf16>
    %c0_12 = arith.constant 0 : index
    %c0_13 = arith.constant 0 : index
    %18 = vector.load %arg6[%c0_12, %c0_13] : memref<128x4xbf16, #tpu.memory_space<vmem>>, vector<128x4xbf16>
    %cst_14 = arith.constant dense<0.000000e+00> : vector<8x4xf32>
    %19 = tpu.matmul %17, %18, %cst_14 {dimension_numbers = #tpu.dot_dimension_numbers<[1], [0], [0], [1], [0, 0, 1, 1], [], []>} : vector<8x128xbf16>, vector<128x4xbf16>, vector<8x4xf32> -> vector<8x4xf32>
    %c0_15 = arith.constant 0 : index
    %c0_16 = arith.constant 0 : index
    %20 = vector.load %arg7[%c0_15, %c0_16] : memref<1x4xf32, #tpu.memory_space<vmem>>, vector<1x4xf32>
    %21 = vector.broadcast %20 : vector<1x4xf32> to vector<8x4xf32>
    %22 = arith.addf %19, %21 : vector<8x4xf32>
    %c0_17 = arith.constant 0 : index
    %c0_18 = arith.constant 0 : index
    %23 = vector.load %arg8[%c0_17, %c0_18] : memref<8x4xf32, #tpu.memory_space<vmem>>, vector<8x4xf32>
    tpu.vector_store %arg8[%c0_17, %c0_18], %22 {strides = array<i32>} : memref<8x4xf32, #tpu.memory_space<vmem>>, vector<8x4xf32>,
    return
  }
  func.func @transform_0(%arg0: i32) -> (i32, i32) {
    %c0_i32 = arith.constant 0 : i32
    %c0_i32_0 = arith.constant 0 : i32
    return %arg0, %c0_i32 : i32, i32
  }
  func.func @transform_1(%arg0: i32) -> (i32, i32) {
    %c0_i32 = arith.constant 0 : i32
    %c0_i32_0 = arith.constant 0 : i32
    %c0_i32_1 = arith.constant 0 : i32
    return %c0_i32, %c0_i32_0 : i32, i32
  }
  func.func @transform_2(%arg0: i32) -> (i32, i32) {
    %c0_i32 = arith.constant 0 : i32
    %c0_i32_0 = arith.constant 0 : i32
    %c0_i32_1 = arith.constant 0 : i32
    return %c0_i32, %c0_i32_0 : i32, i32
  }
  func.func @transform_3(%arg0: i32) -> (i32, i32) {
    %c0_i32 = arith.constant 0 : i32
    %c0_i32_0 = arith.constant 0 : i32
    %c0_i32_1 = arith.constant 0 : i32
    return %c0_i32, %c0_i32_0 : i32, i32
  }
  func.func @transform_4(%arg0: i32) -> (i32, i32) {
    %c0_i32 = arith.constant 0 : i32
    %c0_i32_0 = arith.constant 0 : i32
    %c0_i32_1 = arith.constant 0 : i32
    return %c0_i32, %c0_i32_0 : i32, i32
  }
  func.func @transform_5(%arg0: i32) -> (i32, i32) {
    %c0_i32 = arith.constant 0 : i32
    %c0_i32_0 = arith.constant 0 : i32
    %c0_i32_1 = arith.constant 0 : i32
    return %c0_i32, %c0_i32_0 : i32, i32
  }
  func.func @transform_6(%arg0: i32) -> (i32, i32) {
    %c0_i32 = arith.constant 0 : i32
    %c0_i32_0 = arith.constant 0 : i32
    %c0_i32_1 = arith.constant 0 : i32
    return %c0_i32, %c0_i32_0 : i32, i32
  }
  func.func @transform_7(%arg0: i32) -> (i32, i32) {
    %c0_i32 = arith.constant 0 : i32
    %c0_i32_0 = arith.constant 0 : i32
    return %arg0, %c0_i32 : i32, i32
  }
}

</mosaic_0001>

<bundles_post_ra>
// kernel: tpu_custom_call.1
= control target key start
LH: loop header
LB: loop body
LE: loop exit
PB: predicated region body
PF: predicated region fallthrough
CT: control target
= control target key end

     0   :  { %12 = vsyncpa [#allocation3], 0  ;;  %s457_s24 = smov [#allocation2]   ;;  %s589_s0 = inlined_call_operand.hbm [shape: f32[8,8], index: 0, kind: input, shape index: {}]   ;;  %s590_s1 = inlined_call_operand.vmem [shape: bf16[8,128], index: 1, kind: input, shape index: {}]   ;;  %s591_s2 = inlined_call_operand.vmem [shape: f32[1,128], index: 2, kind: input, shape index: {}]   ;;  %s592_s3 = inlined_call_operand.vmem [shape: bf16[128,128], index: 3, kind: input, shape index: {}]   ;;  %s593_s4 = inlined_call_operand.vmem [shape: f32[1,128], index: 4, kind: input, shape index: {}]   ;;  %s594_s5 = inlined_call_operand.vmem [shape: bf16[128,4], index: 5, kind: input, shape index: {}]   ;;  %s595_s6 = inlined_call_operand.vmem [shape: f32[1,4], index: 6, kind: input, shape index: {}]   ;;  %s596_s7 = inlined_call_operand.vmem [shape: f32[8,4], index: 7, kind: output, shape index: {}]  }
   0x1   :  { %s19_s25 = sshll.u32 %s457_s24, 4  ;;  %s20_s25 = int_to_ptr.vmem [resolvable:$true] %s19_s25 }
   0x2   :  { %s443_s26 = scalar_lea.vmem %s20_s25, 128  ;;  %p448_p1 = scmp.lt.s32.totalorder %s20_s25, %s20_s25 }
   0x3   :  { %p444_p0 = scmp.ne.s32.totalorder %s20_s25, %s443_s26  ;;  %p449_p2 = scmp.lt.s32.totalorder %s443_s26, %s443_s26 }
   0x5   :  { %p450_p3 = por %p449_p2, %p448_p1 }
   0x7   :  { %p451_p4 = pnand %p450_p3, %p444_p0 }
   0x9   :  { %454 = shalt.err (!%p451_p4)
}
   0xa   :  { %22 = dma.hbm_to_vmem [thread:$0]  %s589_s0, 128, %s20_s25, [#allocation3]  }
   0xb   :  { %455 = dma.done.wait [#allocation3], 128  }
   0xc   :  { %456 = vsyncadd [#allocation3], 4294967168  ;;  %v458_v0 = vmov 0.0   ;;  %vm459_vm0 = vmmov 0   ;;  %vm53_vm1 = vcmask 1043456   ;;  %v39_v2 = vld [vmem:[#allocation2] sm:$0xff] }
   0xd   :  { %370 = vmatprep.subr.bf16.mxu0 %v458_v0  ;;  %372 = vmatprep.mubr.msk.bf16.mxu0 %vm459_vm0, %v458_v0  ;;  %v41_v1 = vld [vmem:[%s590_s1] sm:$0xf]  ;;  %v40_v4 = vpack.c.bf16 %v39_v2, %v39_v2  ;;  %v419_v5 = vld [vmem:[%s592_s3 + $0x38] sm:$0xff]   ;;  %vm49_vm2 = vcmask 64512   ;;  %v420_v6 = vld [vmem:[%s592_s3 + $0x30] sm:$0xff]   ;;  %vm323_vm3 = vcmask 31744  }
   0xe   :  { %376 = vmatprep.subr.bf16.mxu1 %v458_v0  ;;  %392 = vmatprep.mubr.msk.bf16.mxu1 %vm459_vm0, %v458_v0  ;;  %v55_v3 = vsel %vm53_vm1, %v41_v1, 0  ;;  %v421_v7 = vld [vmem:[%s592_s3 + $0x28] sm:$0xff]   ;;  %v422_v8 = vld [vmem:[%s592_s3 + $0x20] sm:$0xff]   ;;  %v423_v9 = vld [vmem:[%s592_s3 + $0x18] sm:$0xff]  }
   0xf   :  { %371 = vmatpush3.bf16.msra.mxu0 %v55_v3  ;;  %377 = vmatpush3.bf16.msra.mxu1 %v419_v5  ;;  %v424_v10 = vld [vmem:[%s592_s3 + $0x10] sm:$0xff]   ;;  %v425_v11 = vld [vmem:[%s592_s3 + $0x8] sm:$0xff]   ;;  %v426_v12 = vld [vmem:[%s592_s3] sm:$0xff]  }
  0x10   :  { %396 = vmatprep.subr.bf16.mxu0 %v458_v0  ;;  %378 = vmatprep.subr.bf16.mxu1 %v458_v0  ;;  %v427_v13 = vld [vmem:[%s594_s5 + $0x38] sm:$0xff]   ;;  %v428_v14 = vld [vmem:[%s594_s5 + $0x30] sm:$0xff]   ;;  %v429_v15 = vld [vmem:[%s594_s5 + $0x28] sm:$0xff]  }
  0x11   :  { %v430_v16 = vld [vmem:[%s594_s5 + $0x20] sm:$0xff]   ;;  %v431_v17 = vld [vmem:[%s594_s5 + $0x18] sm:$0xff]   ;;  %v432_v18 = vld [vmem:[%s594_s5 + $0x10] sm:$0xff]  }
  0x12   :  { %373 = vmatmul.mubr.msk.bf16.vlgmr.msra.gmra.mxu0 %vm49_vm2, %v40_v4  ;;  %v330_v19 = vld [vmem:[%s591_s2] ss:$0 sm:$0xff]  ;;  %v433_v27 = vld [vmem:[%s594_s5 + $0x8] sm:$0xff]  }
  0x13   :  { %412 = vmatprep.mubr.msk.bf16.mxu0 %vm459_vm0, %v458_v0  ;;  %379 = vmatpush3.bf16.msra.mxu1 %v420_v6  ;;  %v434_v28 = vld [vmem:[%s594_s5] sm:$0xff]  }
  0x14   :  { %380 = vmatprep.subr.bf16.mxu1 %v458_v0  ;;  %397 = vmatpush3.bf16.msra.mxu0 %v427_v13  ;;  %v332_v29 = vld [vmem:[%s593_s4] ss:$0 sm:$0xff] }
  0x15   :  { %398 = vmatprep.subr.bf16.mxu0 %v458_v0  ;;  %v341_v37 = vld [vmem:[%s595_s6] ss:$0 sm:$0xff] }
  0x17   :  { %381 = vmatpush3.bf16.msra.mxu1 %v421_v7 }
  0x18   :  { %382 = vmatprep.subr.bf16.mxu1 %v458_v0  ;;  %399 = vmatpush3.bf16.msra.mxu0 %v428_v14 }
  0x19   :  { %400 = vmatprep.subr.bf16.mxu0 %v458_v0 }
  0x1b   :  { %383 = vmatpush3.bf16.msra.mxu1 %v422_v8 }
  0x1c   :  { %384 = vmatprep.subr.bf16.mxu1 %v458_v0  ;;  %401 = vmatpush3.bf16.msra.mxu0 %v429_v15 }
  0x1d   :  { %402 = vmatprep.subr.bf16.mxu0 %v458_v0 }
  0x1f   :  { %385 = vmatpush3.bf16.msra.mxu1 %v423_v9 }
  0x20   :  { %386 = vmatprep.subr.bf16.mxu1 %v458_v0  ;;  %403 = vmatpush3.bf16.msra.mxu0 %v430_v16 }
  0x21   :  { %404 = vmatprep.subr.bf16.mxu0 %v458_v0 }
  0x23   :  { %387 = vmatpush3.bf16.msra.mxu1 %v424_v10 }
  0x24   :  { %388 = vmatprep.subr.bf16.mxu1 %v458_v0  ;;  %405 = vmatpush3.bf16.msra.mxu0 %v431_v17 }
  0x25   :  { %406 = vmatprep.subr.bf16.mxu0 %v458_v0 }
  0x27   :  { %389 = vmatpush3.bf16.msra.mxu1 %v425_v11 }
  0x28   :  { %390 = vmatprep.subr.bf16.mxu1 %v458_v0  ;;  %407 = vmatpush3.bf16.msra.mxu0 %v432_v18 }
  0x29   :  { %408 = vmatprep.subr.bf16.mxu0 %v458_v0 }
  0x2b   :  { %391 = vmatpush3.bf16.msra.mxu1 %v426_v12 }
  0x2c   :  { %409 = vmatpush3.bf16.msra.mxu0 %v433_v27 }
  0x2d   :  { %410 = vmatprep.subr.bf16.mxu0 %v458_v0 }
  0x30   :  { %411 = vmatpush3.bf16.msra.mxu0 %v434_v28 }
  0xd2   :  { %v91_v20 = vpop.f32.mrf.mxu0 }
  0xd3   :  { %v92_v21 = vadd.f32 %v330_v19, %v91_v20 }
  0xd4   :  { %v374_v22 = vpop.f32.mrf.mxu0 }
  0xd5   :  { %v97_v23 = vmax.f32 %v92_v21, 0.0 }
  0xd6   :  { %v94_v24 = vpop.f32.mrf.mxu0 }
  0xd7   :  { %v98_v25 = vpack.c.bf16 %v97_v23, %v97_v23 }
  0xd8   :  { %v375_v26 = vpop.f32.mrf.mxu0 }
  0xd9   :  { %393 = vmatmul.mubr.bf16.vlgmr.msra.gmra.mxu1 %v98_v25 }
 0x199   :  { %v204_v30 = vpop.f32.mrf.mxu1 }
 0x19a   :  { %v205_v31 = vadd.f32 %v332_v29, %v204_v30 }
 0x19b   :  { %v394_v32 = vpop.f32.mrf.mxu1 }
 0x19c   :  { %v210_v33 = vmax.f32 %v205_v31, 0.0 }
 0x19d   :  { %v207_v34 = vpop.f32.mrf.mxu1 }
 0x19e   :  { %v211_v35 = vpack.c.bf16 %v210_v33, %v210_v33 }
 0x19f   :  { %v395_v36 = vpop.f32.mrf.mxu1 }
 0x1a0   :  { %413 = vmatmul.mubr.bf16.vlgmr.msra.gmra.mxu0 %v211_v35 }
 0x260   :  { %v317_v38 = vpop.f32.mrf.mxu0 }
 0x261   :  { %v318_v39 = vadd.f32 %v341_v37, %v317_v38 }
 0x262   :  { %v414_v40 = vpop.f32.mrf.mxu0 }
 0x263   :  { %324 = vst.msk [vmem:[%s596_s7] sm:$0xff] %vm323_vm3, %v318_v39 }
 0x264   :  { %v320_v41 = vpop.f32.mrf.mxu0 }
 0x266   :  { %v415_v42 = vpop.f32.mrf.mxu0 }
 0x267   :  { %329 = vsyncpa [#allocation3], 1 }

</bundles_post_ra>
